<compile_context>
chip_gen: v6e
topology: v6e:2x2x1
jax: 0.10.0
libtpu: 0.0.40
codegen_flags: <defaults>
</compile_context>

<pallas_src>
import jax
import jax.numpy as jnp
from jax.experimental import pallas as pl
from jax.experimental.pallas import tpu as pltpu


def _round_up(x, m):
    return ((x + m - 1) // m) * m


def _make_kernel(num_fcs, fc_channels, out_padded):
    """MaskPointHead forward kernel for one (tile_m, C) row tile."""

    def kernel(*refs):
        fine_ref, coarse_ref = refs[0], refs[1]
        out_ref = refs[-1]
        params = refs[2:-1]
        # param layout: wm_0..wm_{L-1}, wlm, wc_all, b_0..b_{L-1}, bl
        wms = params[:num_fcs]
        wlm = params[num_fcs]
        wc_all = params[num_fcs + 1]
        bs = params[num_fcs + 2: 2 * num_fcs + 2]
        bl = params[2 * num_fcs + 2]

        coarse = coarse_ref[...]                               # bf16 (tm, Kp)
        # All coarse-path contributions (every fc layer + logits) fused into a
        # single wide MXU matmul, f32 accumulation.
        cproj = jnp.dot(coarse, wc_all[...],
                        preferred_element_type=jnp.float32)    # (tm, L*Cf + Co_p)

        h = fine_ref[...]                                      # bf16 (tm, Cin)
        off = 0
        for l in range(num_fcs):
            z = (jnp.dot(h, wms[l][...], preferred_element_type=jnp.float32)
                 + cproj[:, off:off + fc_channels]
                 + bs[l][...])
            h = jnp.maximum(z, 0.0).astype(jnp.bfloat16)       # ReLU, back to bf16
            off += fc_channels

        out = (jnp.dot(h, wlm[...], preferred_element_type=jnp.float32)
               + cproj[:, off:off + out_padded]
               + bl[...])
        out_ref[...] = out.astype(out_ref.dtype)

    return kernel


class MaskPointHeadPallas:
    """Pallas implementation of MaskPointHead.forward (kernel_size=1 Conv1d MLP)."""

    # Conservative row tile: fits comfortably in v7x's 64 MiB VMEM while still
    # filling the 256-high MXU on v6e/v7x (and 128 on v5e).
    TILE_M_MAX = 1024

    def __init__(self, num_classes, num_fcs=3, in_channels=256, fc_channels=256,
                 class_agnostic=False, coarse_pred_each_layer=True, key=None):
        assert coarse_pred_each_layer, \
            "this kernel implements the default coarse_pred_each_layer=True"
        self.num_classes = num_classes
        self.num_fcs = num_fcs
        self.in_channels = in_channels
        self.fc_channels = fc_channels
        self.class_agnostic = class_agnostic
        self.out_channels = 1 if class_agnostic else num_classes

        # Lane-padded sizes (128-lane dense loads/stores, full MXU K pass).
        self.kp = _round_up(num_classes, 128)
        self.cout_p = _round_up(self.out_channels, 128)

        if key is None:
            key = jax.random.PRNGKey(0)

        # ---- deterministic synthetic f32 parameters (reference copy) -------
        # Each Conv1d(k=1) weight (C_out, C_in, 1) is stored pre-split along
        # C_in into (main, coarse) parts, transposed to (C_in, C_out).
        self.layers_f32 = []
        fc_in = in_channels
        for _ in range(num_fcs):
            key, k1, k2, k3 = jax.random.split(key, 4)
            scale = 1.0 / jnp.sqrt(jnp.float32(fc_in + num_classes))
            wm = jax.random.normal(k1, (fc_in, fc_channels), jnp.float32) * scale
            wc = jax.random.normal(k2, (num_classes, fc_channels), jnp.float32) * scale
            b = jax.random.normal(k3, (fc_channels,), jnp.float32) * 0.01
            self.layers_f32.append((wm, wc, b))
            fc_in = fc_channels
        # fc_logits: normal_init(std=0.001), zero bias
        key, k1, k2 = jax.random.split(key, 3)
        wlm = jax.random.normal(k1, (fc_in, self.out_channels), jnp.float32) * 0.001
        wlc = jax.random.normal(k2, (num_classes, self.out_channels), jnp.float32) * 0.001
        bl = jnp.zeros((self.out_channels,), jnp.float32)
        self.layers_f32.append((wlm, wlc, bl))

        # ---- kernel parameters: bf16 weights, padded, coarse path fused ----
        wm_list, bias_list, wc_cols = [], [], []
        for (wm, wc, b) in self.layers_f32[:-1]:
            wm_list.append(wm.astype(jnp.bfloat16))
            bias_list.append(b.reshape(1, fc_channels))                       # f32
            wc_pad = jnp.zeros((self.kp, fc_channels), jnp.float32).at[:num_classes].set(wc)
            wc_cols.append(wc_pad)
        wlm_f32, wlc_f32, bl_f32 = self.layers_f32[-1]
        wlm_pad = jnp.zeros((fc_in, self.cout_p), jnp.float32).at[:, :self.out_channels].set(wlm_f32)
        wlc_pad = jnp.zeros((self.kp, self.cout_p), jnp.float32).at[:num_classes, :self.out_channels].set(wlc_f32)
        bl_pad = jnp.zeros((1, self.cout_p), jnp.float32).at[0, :self.out_channels].set(bl_f32)
        wc_all = jnp.concatenate(wc_cols + [wlc_pad], axis=1)                 # (Kp, L*Cf + Co_p)

        self.kernel_params = (
            wm_list                                  # wm_0..wm_{L-1}  (bf16)
            + [wlm_pad.astype(jnp.bfloat16)]         # wlm             (bf16)
            + [wc_all.astype(jnp.bfloat16)]          # wc_all          (bf16)
            + bias_list                              # b_0..b_{L-1}    (f32)
            + [bl_pad]                               # bl              (f32)
        )

    def __call__(self, fine_grained_feats, coarse_feats):
        """fine: (R, in_channels, P), coarse: (R, num_classes, P) -> (R, out_channels, P)."""
        R, Cin, P = fine_grained_feats.shape
        assert Cin == self.in_channels
        assert coarse_feats.shape == (R, self.num_classes, P)
        rows = R * P

        # NCL -> channels-last flattened rows; bf16 for MXU; pad coarse lanes.
        fine_flat = jnp.transpose(fine_grained_feats, (0, 2, 1)).reshape(rows, Cin)
        fine_flat = fine_flat.astype(jnp.bfloat16)
        coarse_flat = jnp.transpose(coarse_feats, (0, 2, 1)).reshape(rows, self.num_classes)
        coarse_flat = jnp.pad(coarse_flat,
                              ((0, 0), (0, self.kp - self.num_classes))).astype(jnp.bfloat16)

        # Row tiling: large M tile over flattened points (not one ROI per step).
        tile_m = min(self.TILE_M_MAX, _round_up(rows, 8))
        padded_rows = _round_up(rows, tile_m)
        if padded_rows != rows:
            fine_flat = jnp.pad(fine_flat, ((0, padded_rows - rows), (0, 0)))
            coarse_flat = jnp.pad(coarse_flat, ((0, padded_rows - rows), (0, 0)))
        grid = (padded_rows // tile_m,)

        kernel = _make_kernel(self.num_fcs, self.fc_channels, self.cout_p)

        data_specs = [
            pl.BlockSpec((tile_m, Cin), lambda i: (i, 0)),
            pl.BlockSpec((tile_m, self.kp), lambda i: (i, 0)),
        ]
        param_specs = [pl.BlockSpec(p.shape, lambda i: (0, 0)) for p in self.kernel_params]

        out_flat = pl.pallas_call(
            kernel,
            out_shape=jax.ShapeDtypeStruct((padded_rows, self.cout_p), jnp.float32),
            grid_spec=pltpu.PrefetchScalarGridSpec(
                num_scalar_prefetch=0,
                grid=grid,
                in_specs=data_specs + param_specs,
                out_specs=pl.BlockSpec((tile_m, self.cout_p), lambda i: (i, 0)),
            ),
            compiler_params=pltpu.CompilerParams(
                dimension_semantics=("parallel",),
                vmem_limit_bytes=64 * 1024 * 1024),
        )(fine_flat, coarse_flat, *self.kernel_params)

        # Drop row / lane padding, back to PyTorch output layout (R, C_out, P).
        out = out_flat[:rows, :self.out_channels]
        return jnp.transpose(out.reshape(R, P, self.out_channels), (0, 2, 1))

    def reference(self, fine_grained_feats, coarse_feats):
        """Pure-JAX reference mirroring the forward math (bf16 matmuls, f32 accum)."""
        R, Cin, P = fine_grained_feats.shape
        x = jnp.transpose(fine_grained_feats, (0, 2, 1)).reshape(R * P, Cin).astype(jnp.bfloat16)
        c = jnp.transpose(coarse_feats, (0, 2, 1)).reshape(R * P, self.num_classes).astype(jnp.bfloat16)
        for l in range(self.num_fcs):
            wm, wc, b = self.layers_f32[l]
            z = (jnp.dot(x, wm.astype(jnp.bfloat16), preferred_element_type=jnp.float32)
                 + jnp.dot(c, wc.astype(jnp.bfloat16), preferred_element_type=jnp.float32)
                 + b[None, :])
            x = jnp.maximum(z, 0.0).astype(jnp.bfloat16)
        wm, wc, b = self.layers_f32[-1]
        out = (jnp.dot(x, wm.astype(jnp.bfloat16), preferred_element_type=jnp.float32)
               + jnp.dot(c, wc.astype(jnp.bfloat16), preferred_element_type=jnp.float32)
               + b[None, :])
        return jnp.transpose(out.reshape(R, P, self.out_channels), (0, 2, 1))


if __name__ == "__main__":
    # Small shapes consistent with the module (real config: 256/256/80/784 pts).
    num_rois, in_channels, fc_channels, num_classes, num_points = 4, 32, 32, 8, 16

    key = jax.random.PRNGKey(0)
    k_fine, k_coarse, k_params = jax.random.split(key, 3)
    fine = jax.random.normal(k_fine, (num_rois, in_channels, num_points), jnp.float32)
    coarse = jax.random.normal(k_coarse, (num_rois, num_classes, num_points), jnp.float32)

    head = MaskPointHeadPallas(num_classes=num_classes, num_fcs=3,
                               in_channels=in_channels, fc_channels=fc_channels,
                               class_agnostic=False, key=k_params)

    out = head(fine, coarse)
    jax.block_until_ready(out)

    ref = head.reference(fine, coarse)
    assert out.shape == (num_rois, num_classes, num_points)
    assert jnp.allclose(out, ref, atol=2e-3, rtol=2e-3), "mismatch vs reference"

    print("KERNEL_OK")
</pallas_src>

<mosaic_0001>
module attributes {stable_mosaic.version = 11 : i64} {
  func.func @kernel(%arg0: i32, %arg1: memref<64x32xbf16, #tpu.memory_space<vmem>>, %arg2: memref<64x128xbf16, #tpu.memory_space<vmem>>, %arg3: memref<32x32xbf16, #tpu.memory_space<vmem>>, %arg4: memref<32x32xbf16, #tpu.memory_space<vmem>>, %arg5: memref<32x32xbf16, #tpu.memory_space<vmem>>, %arg6: memref<32x128xbf16, #tpu.memory_space<vmem>>, %arg7: memref<128x224xbf16, #tpu.memory_space<vmem>>, %arg8: memref<1x32xf32, #tpu.memory_space<vmem>>, %arg9: memref<1x32xf32, #tpu.memory_space<vmem>>, %arg10: memref<1x32xf32, #tpu.memory_space<vmem>>, %arg11: memref<1x128xf32, #tpu.memory_space<vmem>>, %arg12: memref<64x128xf32, #tpu.memory_space<vmem>>) attributes {dimension_semantics = [#tpu.dimension_semantics<parallel>], iteration_bounds = array<i64: 1>, scalar_prefetch = 0 : i64, scratch_operands = 0 : i64, tpu.core_type = #tpu.core_type<tc>, window_params = [{transform_indices = @transform_0, window_bounds = array<i64: 64, 32>}, {transform_indices = @transform_1, window_bounds = array<i64: 64, 128>}, {pipeline_mode = #tpu.pipeline_mode<synchronous>, transform_indices = @transform_2, window_bounds = array<i64: 32, 32>}, {pipeline_mode = #tpu.pipeline_mode<synchronous>, transform_indices = @transform_3, window_bounds = array<i64: 32, 32>}, {pipeline_mode = #tpu.pipeline_mode<synchronous>, transform_indices = @transform_4, window_bounds = array<i64: 32, 32>}, {pipeline_mode = #tpu.pipeline_mode<synchronous>, transform_indices = @transform_5, window_bounds = array<i64: 32, 128>}, {pipeline_mode = #tpu.pipeline_mode<synchronous>, transform_indices = @transform_6, window_bounds = array<i64: 128, 224>}, {pipeline_mode = #tpu.pipeline_mode<synchronous>, transform_indices = @transform_7, window_bounds = array<i64: 1, 32>}, {pipeline_mode = #tpu.pipeline_mode<synchronous>, transform_indices = @transform_8, window_bounds = array<i64: 1, 32>}, {pipeline_mode = #tpu.pipeline_mode<synchronous>, transform_indices = @transform_9, window_bounds = array<i64: 1, 32>}, {pipeline_mode = #tpu.pipeline_mode<synchronous>, transform_indices = @transform_10, window_bounds = array<i64: 1, 128>}, {transform_indices = @transform_11, window_bounds = array<i64: 64, 128>}]} {
    %c0 = arith.constant 0 : index
    %c0_0 = arith.constant 0 : index
    %0 = vector.load %arg2[%c0, %c0_0] : memref<64x128xbf16, #tpu.memory_space<vmem>>, vector<64x128xbf16>
    %c0_1 = arith.constant 0 : index
    %c0_2 = arith.constant 0 : index
    %1 = vector.load %arg7[%c0_1, %c0_2] : memref<128x224xbf16, #tpu.memory_space<vmem>>, vector<128x224xbf16>
    %cst = arith.constant dense<0.000000e+00> : vector<64x224xf32>
    %2 = tpu.matmul %0, %1, %cst {dimension_numbers = #tpu.dot_dimension_numbers<[1], [0], [0], [1], [0, 0, 1, 1], [], []>} : vector<64x128xbf16>, vector<128x224xbf16>, vector<64x224xf32> -> vector<64x224xf32>
    %c0_3 = arith.constant 0 : index
    %c0_4 = arith.constant 0 : index
    %3 = vector.load %arg1[%c0_3, %c0_4] : memref<64x32xbf16, #tpu.memory_space<vmem>>, vector<64x32xbf16>
    %c0_5 = arith.constant 0 : index
    %c0_6 = arith.constant 0 : index
    %4 = vector.load %arg3[%c0_5, %c0_6] : memref<32x32xbf16, #tpu.memory_space<vmem>>, vector<32x32xbf16>
    %cst_7 = arith.constant dense<0.000000e+00> : vector<64x32xf32>
    %5 = tpu.matmul %3, %4, %cst_7 {dimension_numbers = #tpu.dot_dimension_numbers<[1], [0], [0], [1], [0, 0, 1, 1], [], []>} : vector<64x32xbf16>, vector<32x32xbf16>, vector<64x32xf32> -> vector<64x32xf32>
    %6 = vector.extract_strided_slice %2 {offsets = [0, 0], sizes = [64, 32], strides = [1, 1]} : vector<64x224xf32> to vector<64x32xf32>
    %7 = arith.addf %5, %6 : vector<64x32xf32>
    %c0_8 = arith.constant 0 : index
    %c0_9 = arith.constant 0 : index
    %8 = vector.load %arg8[%c0_8, %c0_9] : memref<1x32xf32, #tpu.memory_space<vmem>>, vector<1x32xf32>
    %9 = vector.broadcast %8 : vector<1x32xf32> to vector<64x32xf32>
    %10 = arith.addf %7, %9 : vector<64x32xf32>
    %cst_10 = arith.constant 0.000000e+00 : f32
    %11 = vector.broadcast %cst_10 : f32 to vector<64x32xf32>
    %12 = arith.maximumf %10, %11 : vector<64x32xf32>
    %13 = arith.truncf %12 : vector<64x32xf32> to vector<64x32xbf16>
    %c0_11 = arith.constant 0 : index
    %c0_12 = arith.constant 0 : index
    %14 = vector.load %arg4[%c0_11, %c0_12] : memref<32x32xbf16, #tpu.memory_space<vmem>>, vector<32x32xbf16>
    %cst_13 = arith.constant dense<0.000000e+00> : vector<64x32xf32>
    %15 = tpu.matmul %13, %14, %cst_13 {dimension_numbers = #tpu.dot_dimension_numbers<[1], [0], [0], [1], [0, 0, 1, 1], [], []>} : vector<64x32xbf16>, vector<32x32xbf16>, vector<64x32xf32> -> vector<64x32xf32>
    %16 = vector.extract_strided_slice %2 {offsets = [0, 32], sizes = [64, 32], strides = [1, 1]} : vector<64x224xf32> to vector<64x32xf32>
    %17 = arith.addf %15, %16 : vector<64x32xf32>
    %c0_14 = arith.constant 0 : index
    %c0_15 = arith.constant 0 : index
    %18 = vector.load %arg9[%c0_14, %c0_15] : memref<1x32xf32, #tpu.memory_space<vmem>>, vector<1x32xf32>
    %19 = vector.broadcast %18 : vector<1x32xf32> to vector<64x32xf32>
    %20 = arith.addf %17, %19 : vector<64x32xf32>
    %cst_16 = arith.constant 0.000000e+00 : f32
    %21 = vector.broadcast %cst_16 : f32 to vector<64x32xf32>
    %22 = arith.maximumf %20, %21 : vector<64x32xf32>
    %23 = arith.truncf %22 : vector<64x32xf32> to vector<64x32xbf16>
    %c0_17 = arith.constant 0 : index
    %c0_18 = arith.constant 0 : index
    %24 = vector.load %arg5[%c0_17, %c0_18] : memref<32x32xbf16, #tpu.memory_space<vmem>>, vector<32x32xbf16>
    %cst_19 = arith.constant dense<0.000000e+00> : vector<64x32xf32>
    %25 = tpu.matmul %23, %24, %cst_19 {dimension_numbers = #tpu.dot_dimension_numbers<[1], [0], [0], [1], [0, 0, 1, 1], [], []>} : vector<64x32xbf16>, vector<32x32xbf16>, vector<64x32xf32> -> vector<64x32xf32>
    %26 = vector.extract_strided_slice %2 {offsets = [0, 64], sizes = [64, 32], strides = [1, 1]} : vector<64x224xf32> to vector<64x32xf32>
    %27 = arith.addf %25, %26 : vector<64x32xf32>
    %c0_20 = arith.constant 0 : index
    %c0_21 = arith.constant 0 : index
    %28 = vector.load %arg10[%c0_20, %c0_21] : memref<1x32xf32, #tpu.memory_space<vmem>>, vector<1x32xf32>
    %29 = vector.broadcast %28 : vector<1x32xf32> to vector<64x32xf32>
    %30 = arith.addf %27, %29 : vector<64x32xf32>
    %cst_22 = arith.constant 0.000000e+00 : f32
    %31 = vector.broadcast %cst_22 : f32 to vector<64x32xf32>
    %32 = arith.maximumf %30, %31 : vector<64x32xf32>
    %33 = arith.truncf %32 : vector<64x32xf32> to vector<64x32xbf16>
    %c0_23 = arith.constant 0 : index
    %c0_24 = arith.constant 0 : index
    %34 = vector.load %arg6[%c0_23, %c0_24] : memref<32x128xbf16, #tpu.memory_space<vmem>>, vector<32x128xbf16>
    %cst_25 = arith.constant dense<0.000000e+00> : vector<64x128xf32>
    %35 = tpu.matmul %33, %34, %cst_25 {dimension_numbers = #tpu.dot_dimension_numbers<[1], [0], [0], [1], [0, 0, 1, 1], [], []>} : vector<64x32xbf16>, vector<32x128xbf16>, vector<64x128xf32> -> vector<64x128xf32>
    %36 = vector.extract_strided_slice %2 {offsets = [0, 96], sizes = [64, 128], strides = [1, 1]} : vector<64x224xf32> to vector<64x128xf32>
    %37 = arith.addf %35, %36 : vector<64x128xf32>
    %c0_26 = arith.constant 0 : index
    %c0_27 = arith.constant 0 : index
    %38 = vector.load %arg11[%c0_26, %c0_27] : memref<1x128xf32, #tpu.memory_space<vmem>>, vector<1x128xf32>
    %39 = vector.broadcast %38 : vector<1x128xf32> to vector<64x128xf32>
    %40 = arith.addf %37, %39 : vector<64x128xf32>
    %c0_28 = arith.constant 0 : index
    %c0_29 = arith.constant 0 : index
    %41 = vector.load %arg12[%c0_28, %c0_29] : memref<64x128xf32, #tpu.memory_space<vmem>>, vector<64x128xf32>
    tpu.vector_store %arg12[%c0_28, %c0_29], %40 {strides = array<i32>} : memref<64x128xf32, #tpu.memory_space<vmem>>, vector<64x128xf32>,
    return
  }
  func.func @transform_0(%arg0: i32) -> (i32, i32) {
    %c0_i32 = arith.constant 0 : i32
    %c0_i32_0 = arith.constant 0 : i32
    return %arg0, %c0_i32 : i32, i32
  }
  func.func @transform_1(%arg0: i32) -> (i32, i32) {
    %c0_i32 = arith.constant 0 : i32
    %c0_i32_0 = arith.constant 0 : i32
    return %arg0, %c0_i32 : i32, i32
  }
  func.func @transform_2(%arg0: i32) -> (i32, i32) {
    %c0_i32 = arith.constant 0 : i32
    %c0_i32_0 = arith.constant 0 : i32
    %c0_i32_1 = arith.constant 0 : i32
    return %c0_i32, %c0_i32_0 : i32, i32
  }
  func.func @transform_3(%arg0: i32) -> (i32, i32) {
    %c0_i32 = arith.constant 0 : i32
    %c0_i32_0 = arith.constant 0 : i32
    %c0_i32_1 = arith.constant 0 : i32
    return %c0_i32, %c0_i32_0 : i32, i32
  }
  func.func @transform_4(%arg0: i32) -> (i32, i32) {
    %c0_i32 = arith.constant 0 : i32
    %c0_i32_0 = arith.constant 0 : i32
    %c0_i32_1 = arith.constant 0 : i32
    return %c0_i32, %c0_i32_0 : i32, i32
  }
  func.func @transform_5(%arg0: i32) -> (i32, i32) {
    %c0_i32 = arith.constant 0 : i32
    %c0_i32_0 = arith.constant 0 : i32
    %c0_i32_1 = arith.constant 0 : i32
    return %c0_i32, %c0_i32_0 : i32, i32
  }
  func.func @transform_6(%arg0: i32) -> (i32, i32) {
    %c0_i32 = arith.constant 0 : i32
    %c0_i32_0 = arith.constant 0 : i32
    %c0_i32_1 = arith.constant 0 : i32
    return %c0_i32, %c0_i32_0 : i32, i32
  }
  func.func @transform_7(%arg0: i32) -> (i32, i32) {
    %c0_i32 = arith.constant 0 : i32
    %c0_i32_0 = arith.constant 0 : i32
    %c0_i32_1 = arith.constant 0 : i32
    return %c0_i32, %c0_i32_0 : i32, i32
  }
  func.func @transform_8(%arg0: i32) -> (i32, i32) {
    %c0_i32 = arith.constant 0 : i32
    %c0_i32_0 = arith.constant 0 : i32
    %c0_i32_1 = arith.constant 0 : i32
    return %c0_i32, %c0_i32_0 : i32, i32
  }
  func.func @transform_9(%arg0: i32) -> (i32, i32) {
    %c0_i32 = arith.constant 0 : i32
    %c0_i32_0 = arith.constant 0 : i32
    %c0_i32_1 = arith.constant 0 : i32
    return %c0_i32, %c0_i32_0 : i32, i32
  }
  func.func @transform_10(%arg0: i32) -> (i32, i32) {
    %c0_i32 = arith.constant 0 : i32
    %c0_i32_0 = arith.constant 0 : i32
    %c0_i32_1 = arith.constant 0 : i32
    return %c0_i32, %c0_i32_0 : i32, i32
  }
  func.func @transform_11(%arg0: i32) -> (i32, i32) {
    %c0_i32 = arith.constant 0 : i32
    %c0_i32_0 = arith.constant 0 : i32
    return %arg0, %c0_i32 : i32, i32
  }
}

</mosaic_0001>

<bundles_post_ra>
// kernel: tpu_custom_call.1
= control target key start
LH: loop header
LB: loop body
LE: loop exit
PB: predicated region body
PF: predicated region fallthrough
CT: control target
= control target key end

     0   :  { %v1067_v2 = vmov 0   ;;  %vm285_vm0 = vcmask 261120   ;;  %s1295_s0 = inlined_call_operand.vmem [shape: bf16[64,32], index: 0, kind: input, shape index: {}]   ;;  %s1296_s1 = inlined_call_operand.vmem [shape: bf16[64,128], index: 1, kind: input, shape index: {}]   ;;  %s1297_s2 = inlined_call_operand.vmem [shape: bf16[32,32], index: 2, kind: input, shape index: {}]   ;;  %s1298_s3 = inlined_call_operand.vmem [shape: bf16[32,32], index: 3, kind: input, shape index: {}]   ;;  %s1299_s4 = inlined_call_operand.vmem [shape: bf16[32,32], index: 4, kind: input, shape index: {}]   ;;  %s1300_s5 = inlined_call_operand.vmem [shape: bf16[32,128], index: 5, kind: input, shape index: {}]   ;;  %s1301_s6 = inlined_call_operand.vmem [shape: bf16[128,224], index: 6, kind: input, shape index: {}]   ;;  %s1302_s7 = inlined_call_operand.vmem [shape: f32[1,32], index: 7, kind: input, shape index: {}]   ;;  %s1303_s8 = inlined_call_operand.vmem [shape: f32[1,32], index: 8, kind: input, shape index: {}]   ;;  %s1304_s9 = inlined_call_operand.vmem [shape: f32[1,32], index: 9, kind: input, shape index: {}]   ;;  %s1305_s10 = inlined_call_operand.vmem [shape: f32[1,128], index: 10, kind: input, shape index: {}]   ;;  %s1306_s11 = inlined_call_operand.hbm [shape: f32[64,128], index: 11, kind: output, shape index: {}]  }
   0x1   :  { %v1005_v0 = vld [vmem:[%s1301_s6 + $0x74] ss:$8 sps:$4 sm:$0xff]   ;;  %v1007_v1 = vld [vmem:[%s1301_s6 + $0x70] ss:$8 sps:$4 sm:$0xff]   ;;  %200 = vmatprep.mubr.bf16.mxu0 %v1067_v2  ;;  %v1008_v3 = vld [vmem:[%s1301_s6 + $0x64] ss:$8 sps:$4 sm:$0xff]  }
   0x2   :  { %168 = vmatprep.subr.bf16.mxu0 %v1005_v0  ;;  %v1010_v4 = vld [vmem:[%s1301_s6 + $0x60] ss:$8 sps:$4 sm:$0xff]   ;;  %v1011_v5 = vld [vmem:[%s1301_s6 + $0x54] ss:$8 sps:$4 sm:$0xff]   ;;  %v1013_v6 = vld [vmem:[%s1301_s6 + $0x50] ss:$8 sps:$4 sm:$0xff]  }
   0x3   :  { %169 = vmatpush1.bf16.msra.mxu0 %v1007_v1  ;;  %v1014_v7 = vld [vmem:[%s1301_s6 + $0x44] ss:$8 sps:$4 sm:$0xff]   ;;  %v1016_v9 = vld [vmem:[%s1301_s6 + $0x40] ss:$8 sps:$4 sm:$0xff]   ;;  %v1017_v11 = vld [vmem:[%s1301_s6 + $0x34] ss:$8 sps:$4 sm:$0xff]  }
   0x4   :  { %170 = vmatprep.subr.bf16.mxu0 %v1008_v3  ;;  %v1023_v8 = vld [vmem:[%s1297_s2 + $0x8] sm:$0xff]   ;;  %v1027_v10 = vld [vmem:[%s1297_s2] sm:$0xff]   ;;  %v1019_v14 = vld [vmem:[%s1301_s6 + $0x30] ss:$8 sps:$4 sm:$0xff]  }
   0x5   :  { %950 = vmatprep.subr.bf16.mxu1 %v1023_v8  ;;  %v1031_v12 = vld [vmem:[%s1295_s0] sm:$0xff]   ;;  %v1032_v13 = vld [vmem:[%s1295_s0 + $0x8] sm:$0xff]   ;;  %v1035_v16 = vld [vmem:[%s1295_s0 + $0x10] sm:$0xff]  }
   0x6   :  { %951 = vmatpush3.bf16.msra.mxu1 %v1023_v8  ;;  %v1020_v15 = vld [vmem:[%s1301_s6 + $0x24] ss:$8 sps:$4 sm:$0xff]   ;;  %954 = vmatprep.mubr.msk.bf16.mxu1 %vm285_vm0, %v1031_v12  ;;  %v1022_v17 = vld [vmem:[%s1301_s6 + $0x20] ss:$8 sps:$4 sm:$0xff]   ;;  %v1024_v18 = vld [vmem:[%s1301_s6 + $0x14] ss:$8 sps:$4 sm:$0xff]  }
   0x7   :  { %171 = vmatpush1.bf16.msra.mxu0 %v1010_v4  ;;  %952 = vmatprep.subr.bf16.mxu1 %v1027_v10  ;;  %v1036_v19 = vld [vmem:[%s1295_s0 + $0x18] sm:$0xff]   ;;  %v1028_v21 = vld [vmem:[%s1301_s6 + $0x4] ss:$8 sps:$4 sm:$0xff]  }
   0x8   :  { %172 = vmatprep.subr.bf16.mxu0 %v1011_v5  ;;  %v1026_v20 = vld [vmem:[%s1301_s6 + $0x10] ss:$8 sps:$4 sm:$0xff]  }
   0xa   :  { %953 = vmatpush3.bf16.msra.mxu1 %v1027_v10 }
   0xb   :  { %173 = vmatpush1.bf16.msra.mxu0 %v1013_v6 }
   0xc   :  { %174 = vmatprep.subr.bf16.mxu0 %v1014_v7 }
   0xd   :  { %955 = vmatmul.mubr.msk.bf16.vlgmr.msra.gmra.mxu1 %vm285_vm0, %v1032_v13 }
   0xe   :  { %958 = vmatprep.mubr.msk.bf16.mxu1 %vm285_vm0, %v1035_v16 }
   0xf   :  { %175 = vmatpush1.bf16.msra.mxu0 %v1016_v9 }
  0x10   :  { %176 = vmatprep.subr.bf16.mxu0 %v1017_v11 }
  0x13   :  { %177 = vmatpush1.bf16.msra.mxu0 %v1019_v14 }
  0x14   :  { %178 = vmatprep.subr.bf16.mxu0 %v1020_v15 }
  0x17   :  { %179 = vmatpush1.bf16.msra.mxu0 %v1022_v17 }
  0x18   :  { %180 = vmatprep.subr.bf16.mxu0 %v1024_v18 }
  0x19   :  { %16 = vsyncpa [#allocation3], 0  ;;  %959 = vmatmul.mubr.msk.bf16.gmra.mxu1 %vm285_vm0, %v1036_v19  ;;  %v1030_v22 = vld [vmem:[%s1301_s6] ss:$8 sps:$4 sm:$0xff]   ;;  %v1037_v25 = vld [vmem:[%s1296_s1 + $0x10] sm:$0xff]  }
  0x1a   :  { %v1033_v23 = vld [vmem:[%s1296_s1] sm:$0xff]   ;;  %v1034_v24 = vld [vmem:[%s1296_s1 + $0x8] sm:$0xff]   ;;  %v1038_v26 = vld [vmem:[%s1296_s1 + $0x18] sm:$0xff]   ;;  %s1068_s1 = smov 96  }
  0x1b   :  { %181 = vmatpush1.bf16.msra.mxu0 %v1026_v20  ;;  %v1039_v27 = vld [vmem:[%s1298_s3 + $0x8] sm:$0xff]   ;;  %v1040_v28 = vld [vmem:[%s1298_s3] sm:$0xff]   ;;  %s1069_s3 = smov 64  }
  0x1c   :  { %182 = vmatprep.subr.bf16.mxu0 %v1028_v21  ;;  %962 = vmatprep.subr.bf16.mxu1 %v1039_v27  ;;  %v904_v34 = vld [vmem:[%s1302_s7] ss:$0 sm:$0xff]  ;;  %s1070_s7 = smov 32   ;;  %v1041_v18 = vld [vmem:[%s1299_s4 + $0x8] sm:$0xff]  }
  0x1d   :  { %963 = vmatpush3.bf16.msra.mxu1 %v1039_v27  ;;  %v1042_v19 = vld [vmem:[%s1299_s4] sm:$0xff]  }
  0x1e   :  { %964 = vmatprep.subr.bf16.mxu1 %v1040_v28 }
  0x1f   :  { %183 = vmatpush1.bf16.msra.mxu0 %v1030_v22 }
  0x21   :  { %965 = vmatpush3.bf16.msra.mxu1 %v1040_v28  ;;  %v911_v28 = vld [vmem:[%s1303_s8] ss:$0 sm:$0xff] }
  0x22   :  { %201 = vmatmul.mubr.bf16.vlgmr.msra.gmra.mxu0 %v1033_v23  ;;  %974 = vmatprep.subr.bf16.mxu1 %v1041_v18 }
  0x23   :  { %210 = vmatprep.mubr.bf16.mxu0 %v1067_v2 }
  0x2a   :  { %211 = vmatmul.mubr.bf16.gmra.mxu0 %v1034_v24 }
  0x2b   :  { %220 = vmatprep.mubr.bf16.mxu0 %v1067_v2 }
  0x32   :  { %221 = vmatmul.mubr.bf16.gmra.mxu0 %v1037_v25 }
  0x33   :  { %230 = vmatprep.mubr.bf16.mxu0 %v1067_v2 }
  0x3a   :  { %231 = vmatmul.mubr.bf16.gmra.mxu0 %v1038_v26 }
  0xcd   :  { %v956_v29 = vpop.f32.mrf.mxu1 }
  0xcf   :  { %v332_v30 = vpop.f32.mrf.mxu1 }
  0xd1   :  { %v957_v31 = vpop.f32.mrf.mxu1 }
  0xd3   :  { %v335_v36 = vpop.f32.mrf.mxu1 }
  0xd9   :  { %v960_v41 = vpop.f32.mrf.mxu1 }
  0xdb   :  { %v348_v48 = vpop.f32.mrf.mxu1 }
  0xdd   :  { %v961_v54 = vpop.f32.mrf.mxu1 }
  0xdf   :  { %v351_v61 = vpop.f32.mrf.mxu1 }
  0xe2   :  { %v1222_v32 = vpop.f32.mrf.mxu0 }
  0xe3   :  { %v333_v33 = vadd.f32 %v332_v30, %v1222_v32  ;;  %414 = vrot.lane.b32.xlu0 %v1222_v32, %s1068_s1 }
  0xe4   :  { %v1230_v35 = vpop.f32.mrf.mxu0 }
  0xe5   :  { %v370_v38 = vadd.f32 %v904_v34, %v333_v33 }
  0xe6   :  { %v1232_v37 = vpop.f32.mrf.mxu0 }
  0xe7   :  { %v336_v39 = vadd.f32 %v335_v36, %v1232_v37  ;;  %416 = vrot.lane.b32.xlu0 %v1232_v37, %s1068_s1  ;;  %v378_v44 = vmax.f32 %v370_v38, 0.0 }
  0xe8   :  { %v1237_v40 = vpop.f32.mrf.mxu0 }
  0xe9   :  { %v371_v42 = vadd.f32 %v904_v34, %v336_v39 }
  0xea   :  { %v212_v43 = vpop.f32.mrf.mxu0 }
  0xeb   :  { %v379_v45 = vmax.f32 %v371_v42, 0.0  ;;  %v341_v46 = vadd.f32 %v956_v29, %v212_v43  ;;  %418 = vrot.lane.b32.xlu1 %v212_v43, %s1068_s1 }
  0xec   :  { %v214_v47 = vpop.f32.mrf.mxu0 }
  0xed   :  { %v386_v49 = vpack.c.bf16 %v379_v45, %v378_v44  ;;  %v372_v51 = vadd.f32 %v904_v34, %v341_v46 }
  0xee   :  { %v216_v50 = vpop.f32.mrf.mxu0 }
  0xef   :  { %v344_v52 = vadd.f32 %v957_v31, %v216_v50  ;;  %966 = vmatprep.mubr.msk.bf16.mxu1 %vm285_vm0, %v386_v49  ;;  %420 = vrot.lane.b32.xlu1 %v216_v50, %s1068_s1  ;;  %v380_v57 = vmax.f32 %v372_v51, 0.0 }
  0xf0   :  { %v218_v53 = vpop.f32.mrf.mxu0 }
  0xf1   :  { %v373_v55 = vadd.f32 %v904_v34, %v344_v52 }
  0xf2   :  { %v222_v56 = vpop.f32.mrf.mxu0 }
  0xf3   :  { %v381_v58 = vmax.f32 %v373_v55, 0.0  ;;  %v349_v59 = vadd.f32 %v348_v48, %v222_v56  ;;  %422 = vrot.lane.b32.xlu0 %v222_v56, %s1068_s1 }
  0xf4   :  { %v224_v60 = vpop.f32.mrf.mxu0 }
  0xf5   :  { %v387_v62 = vpack.c.bf16 %v381_v58, %v380_v57  ;;  %v374_v0 = vadd.f32 %v904_v34, %v349_v59 }
  0xf6   :  { %v226_v63 = vpop.f32.mrf.mxu0 }
  0xf7   :  { %v352_v1 = vadd.f32 %v351_v61, %v226_v63  ;;  %967 = vmatmul.mubr.msk.bf16.vlgmr.msra.gmra.mxu1 %vm285_vm0, %v387_v62  ;;  %424 = vrot.lane.b32.xlu1 %v226_v63, %s1068_s1  ;;  %v382_v5 = vmax.f32 %v374_v0, 0.0 }
  0xf8   :  { %v228_v2 = vpop.f32.mrf.mxu0  ;;  %975 = vmatpush3.bf16.msra.mxu1 %v1041_v18 }
  0xf9   :  { %v375_v3 = vadd.f32 %v904_v34, %v352_v1  ;;  %976 = vmatprep.subr.bf16.mxu1 %v1042_v19  ;;  %v1043_v1 = vld [vmem:[%s1300_s5 + $0x8] sm:$0xff]  }
  0xfa   :  { %v232_v4 = vpop.f32.mrf.mxu0 }
  0xfb   :  { %v383_v6 = vmax.f32 %v375_v3, 0.0  ;;  %v357_v7 = vadd.f32 %v960_v41, %v232_v4  ;;  %426 = vrot.lane.b32.xlu0 %v232_v4, %s1068_s1 }
  0xfc   :  { %v234_v8 = vpop.f32.mrf.mxu0  ;;  %977 = vmatpush3.bf16.msra.mxu1 %v1042_v19 }
  0xfd   :  { %v388_v9 = vpack.c.bf16 %v383_v6, %v382_v5  ;;  %v376_v11 = vadd.f32 %v904_v34, %v357_v7  ;;  %986 = vmatprep.subr.bf16.mxu1 %v1043_v1 }
  0xfe   :  { %v236_v10 = vpop.f32.mrf.mxu0 }
  0xff   :  { %v360_v12 = vadd.f32 %v961_v54, %v236_v10  ;;  %970 = vmatprep.mubr.msk.bf16.mxu1 %vm285_vm0, %v388_v9  ;;  %558 = vrot.lane.b32.xlu0 %v1222_v32, %s1069_s3  ;;  %v384_v14 = vmax.f32 %v376_v11, 0.0 }
 0x100   :  { %428 = vrot.lane.b32.xlu1 %v236_v10, %s1068_s1  ;;  %v238_v17 = vpop.f32.mrf.mxu0 }
 0x101   :  { %v377_v13 = vadd.f32 %v904_v34, %v360_v12  ;;  %v918_v12 = vld [vmem:[%s1304_s9] ss:$0 sm:$0xff] }
 0x103   :  { %v385_v15 = vmax.f32 %v377_v13, 0.0  ;;  %562 = vrot.lane.b32.xlu0 %v212_v43, %s1069_s3 }
 0x104   :  { %560 = vrot.lane.b32.xlu1 %v1232_v37, %s1069_s3 }
 0x105   :  { %v389_v16 = vpack.c.bf16 %v385_v15, %v384_v14 }
 0x107   :  { %566 = vrot.lane.b32.xlu0 %v222_v56, %s1069_s3  ;;  %971 = vmatmul.mubr.msk.bf16.gmra.mxu1 %vm285_vm0, %v389_v16 }
 0x108   :  { %564 = vrot.lane.b32.xlu1 %v216_v50, %s1069_s3 }
 0x10b   :  { %570 = vrot.lane.b32.xlu0 %v232_v4, %s1069_s3 }
 0x10c   :  { %568 = vrot.lane.b32.xlu1 %v226_v63, %s1069_s3 }
 0x10f   :  { %710 = vrot.lane.b32.xlu0 %v1222_v32, %s1070_s7 }
 0x110   :  { %572 = vrot.lane.b32.xlu1 %v236_v10, %s1069_s3 }
 0x113   :  { %714 = vrot.lane.b32.xlu0 %v1232_v37, %s1070_s7 }
 0x114   :  { %712 = vrot.lane.b32.xlu1 %v1230_v35, %s1070_s7 }
 0x117   :  { %718 = vrot.lane.b32.xlu0 %v212_v43, %s1070_s7 }
 0x118   :  { %716 = vrot.lane.b32.xlu1 %v1237_v40, %s1070_s7 }
 0x11b   :  { %722 = vrot.lane.b32.xlu0 %v216_v50, %s1070_s7 }
 0x11c   :  { %720 = vrot.lane.b32.xlu1 %v214_v47, %s1070_s7 }
 0x11f   :  { %726 = vrot.lane.b32.xlu0 %v222_v56, %s1070_s7 }
 0x120   :  { %724 = vrot.lane.b32.xlu1 %v218_v53, %s1070_s7 }
 0x123   :  { %730 = vrot.lane.b32.xlu0 %v226_v63, %s1070_s7 }
 0x124   :  { %728 = vrot.lane.b32.xlu1 %v224_v60, %s1070_s7 }
 0x127   :  { %734 = vrot.lane.b32.xlu0 %v232_v4, %s1070_s7 }
 0x128   :  { %732 = vrot.lane.b32.xlu1 %v228_v2, %s1070_s7  ;;  %v1044_v2 = vld [vmem:[%s1300_s5] sm:$0xff]  }
 0x12b   :  { %738 = vrot.lane.b32.xlu0 %v236_v10, %s1070_s7 }
 0x12c   :  { %736 = vrot.lane.b32.xlu1 %v234_v8, %s1070_s7 }
 0x130   :  { %740 = vrot.lane.b32.xlu1 %v238_v17, %s1070_s7 }
 0x155   :  { %v415_v21 = vpop.permute.xlu0 %414 }
 0x159   :  { %v417_v30 = vpop.permute.xlu0 %416 }
 0x15d   :  { %v419_v20 = vpop.permute.xlu1 %418 }
 0x161   :  { %v421_v25 = vpop.permute.xlu1 %420 }
 0x165   :  { %v423_v43 = vpop.permute.xlu0 %422 }
 0x169   :  { %v425_v44 = vpop.permute.xlu1 %424 }
 0x16d   :  { %v427_v47 = vpop.permute.xlu0 %426 }
 0x171   :  { %v559_v3 = vpop.permute.xlu0 %558 }
 0x172   :  { %v429_v49 = vpop.permute.xlu1 %428 }
 0x175   :  { %v563_v7 = vpop.permute.xlu0 %562 }
 0x176   :  { %v561_v4 = vpop.permute.xlu1 %560 }
 0x17a   :  { %v565_v9 = vpop.permute.xlu1 %564 }
 0x1b7   :  { %v968_v22 = vpop.f32.mrf.mxu1 }
 0x1b8   :  { %v493_v26 = vadd.f32 %v968_v22, %v419_v20 }
 0x1b9   :  { %v484_v23 = vpop.f32.mrf.mxu1 }
 0x1ba   :  { %v485_v24 = vadd.f32 %v484_v23, %v415_v21  ;;  %v524_v35 = vadd.f32 %v911_v28, %v493_v26  ;;  %v569_v26 = vpop.permute.xlu1 %568 }
 0x1bb   :  { %v969_v27 = vpop.f32.mrf.mxu1 }
 0x1bc   :  { %v496_v29 = vadd.f32 %v969_v27, %v421_v25  ;;  %v522_v32 = vadd.f32 %v911_v28, %v485_v24  ;;  %v532_v40 = vmax.f32 %v524_v35, 0.0  ;;  %v567_v24 = vpop.permute.xlu0 %566 }
 0x1bd   :  { %v487_v31 = vpop.f32.mrf.mxu1 }
 0x1be   :  { %v525_v33 = vadd.f32 %v911_v28, %v496_v29  ;;  %v488_v34 = vadd.f32 %v487_v31, %v417_v30  ;;  %v530_v38 = vmax.f32 %v522_v32, 0.0  ;;  %v573_v32 = vpop.permute.xlu1 %572 }
 0x1c0   :  { %v523_v36 = vadd.f32 %v911_v28, %v488_v34  ;;  %v533_v37 = vmax.f32 %v525_v33, 0.0  ;;  %v571_v30 = vpop.permute.xlu0 %570 }
 0x1c2   :  { %v531_v39 = vmax.f32 %v523_v36, 0.0  ;;  %v539_v42 = vpack.c.bf16 %v533_v37, %v532_v40 }
 0x1c4   :  { %v538_v41 = vpack.c.bf16 %v531_v39, %v530_v38 }
 0x1c6   :  { %978 = vmatprep.mubr.msk.bf16.mxu1 %vm285_vm0, %v538_v41 }
 0x1c7   :  { %v972_v45 = vpop.f32.mrf.mxu1  ;;  %979 = vmatmul.mubr.msk.bf16.vlgmr.msra.gmra.mxu1 %vm285_vm0, %v539_v42 }
 0x1c8   :  { %v509_v50 = vadd.f32 %v972_v45, %v427_v47  ;;  %987 = vmatpush3.bf16.msra.mxu1 %v1043_v1 }
 0x1c9   :  { %v500_v46 = vpop.f32.mrf.mxu1  ;;  %988 = vmatprep.subr.bf16.mxu1 %v1044_v2 }
 0x1ca   :  { %v501_v48 = vadd.f32 %v500_v46, %v423_v43  ;;  %v528_v57 = vadd.f32 %v911_v28, %v509_v50 }
 0x1cb   :  { %v973_v51 = vpop.f32.mrf.mxu1 }
 0x1cc   :  { %v512_v52 = vadd.f32 %v973_v51, %v429_v49  ;;  %v526_v54 = vadd.f32 %v911_v28, %v501_v48  ;;  %v536_v62 = vmax.f32 %v528_v57, 0.0  ;;  %989 = vmatpush3.bf16.msra.mxu1 %v1044_v2  ;;  %v713_v48 = vpop.permute.xlu1 %712  ;;  %v711_v49 = vpop.permute.xlu0 %710 }
 0x1cd   :  { %v503_v53 = vpop.f32.mrf.mxu1 }
 0x1ce   :  { %v529_v55 = vadd.f32 %v911_v28, %v512_v52  ;;  %v504_v56 = vadd.f32 %v503_v53, %v425_v44  ;;  %v534_v60 = vmax.f32 %v526_v54, 0.0 }
 0x1d0   :  { %v527_v58 = vadd.f32 %v911_v28, %v504_v56  ;;  %v537_v59 = vmax.f32 %v529_v55, 0.0  ;;  %v717_v50 = vpop.permute.xlu1 %716  ;;  %v715_v51 = vpop.permute.xlu0 %714 }
 0x1d2   :  { %v535_v61 = vmax.f32 %v527_v58, 0.0  ;;  %v541_v0 = vpack.c.bf16 %v537_v59, %v536_v62  ;;  %v925_v59 = vld [vmem:[%s1305_s10] ss:$0 sm:$0xff]  ;;  %v742_v62 = vsel %vm285_vm0, %v711_v49, %v713_v48  ;;  %s1071_s10 = smov [#allocation2]  }
 0x1d3   :  { %s863_s23 = sshll.u32 %s1071_s10, 4  ;;  %s864_s23 = int_to_ptr.vmem [resolvable:$true] %s863_s23 }
 0x1d4   :  { %v540_v63 = vpack.c.bf16 %v535_v61, %v534_v60  ;;  %v721_v52 = vpop.permute.xlu1 %720  ;;  %v719_v53 = vpop.permute.xlu0 %718  ;;  %s1045_s24 = scalar_lea.vmem %s864_s23, 1024  ;;  %p1050_p1 = scmp.lt.s32.totalorder %s864_s23, %s864_s23 }
 0x1d5   :  { %v744_v57 = vsel %vm285_vm0, %v719_v53, %v721_v52  ;;  %p1046_p0 = scmp.ne.s32.totalorder %s864_s23, %s1045_s24  ;;  %p1051_p2 = scmp.lt.s32.totalorder %s1045_s24, %s1045_s24 }
 0x1d6   :  { %982 = vmatprep.mubr.msk.bf16.mxu1 %vm285_vm0, %v540_v63 }
 0x1d7   :  { %983 = vmatmul.mubr.msk.bf16.gmra.mxu1 %vm285_vm0, %v541_v0  ;;  %p1052_p3 = por %p1051_p2, %p1050_p1 }
 0x1d8   :  { %v725_v54 = vpop.permute.xlu1 %724  ;;  %v723_v55 = vpop.permute.xlu0 %722 }
 0x1d9   :  { %v745_v2 = vsel %vm285_vm0, %v723_v55, %v725_v54  ;;  %p1053_p4 = pnand %p1052_p3, %p1046_p0 }
 0x1dc   :  { %v729_v56 = vpop.permute.xlu1 %728  ;;  %v727_v60 = vpop.permute.xlu0 %726 }
 0x287   :  { %v980_v5 = vpop.f32.mrf.mxu1 }
 0x288   :  { %v637_v10 = vadd.f32 %v980_v5, %v563_v7  ;;  %v743_v7 = vsel %vm285_vm0, %v715_v51, %v717_v50 }
 0x289   :  { %v628_v6 = vpop.f32.mrf.mxu1 }
 0x28a   :  { %v629_v8 = vadd.f32 %v628_v6, %v559_v3  ;;  %v668_v18 = vadd.f32 %v918_v12, %v637_v10 }
 0x28b   :  { %v981_v11 = vpop.f32.mrf.mxu1 }
 0x28c   :  { %v640_v13 = vadd.f32 %v981_v11, %v565_v9  ;;  %v666_v15 = vadd.f32 %v918_v12, %v629_v8  ;;  %v676_v23 = vmax.f32 %v668_v18, 0.0  ;;  %v731_v9 = vpop.permute.xlu0 %730 }
 0x28d   :  { %v631_v14 = vpop.f32.mrf.mxu1 }
 0x28e   :  { %v669_v16 = vadd.f32 %v918_v12, %v640_v13  ;;  %v632_v17 = vadd.f32 %v631_v14, %v561_v4  ;;  %v674_v21 = vmax.f32 %v666_v15, 0.0  ;;  %v733_v4 = vpop.permute.xlu1 %732 }
 0x290   :  { %v667_v19 = vadd.f32 %v918_v12, %v632_v17  ;;  %v677_v20 = vmax.f32 %v669_v16, 0.0  ;;  %v735_v14 = vpop.permute.xlu0 %734 }
 0x292   :  { %v675_v22 = vmax.f32 %v667_v19, 0.0  ;;  %v683_v27 = vpack.c.bf16 %v677_v20, %v676_v23  ;;  %v737_v13 = vpop.permute.xlu1 %736  ;;  %v746_v19 = vsel %vm285_vm0, %v727_v60, %v729_v56 }
 0x293   :  { %v748_v15 = vsel %vm285_vm0, %v735_v14, %v737_v13 }
 0x294   :  { %v682_v25 = vpack.c.bf16 %v675_v22, %v674_v21  ;;  %v739_v21 = vpop.permute.xlu0 %738 }
 0x296   :  { %990 = vmatprep.mubr.msk.bf16.mxu1 %vm285_vm0, %v682_v25  ;;  %v741_v17 = vpop.permute.xlu1 %740 }
 0x297   :  { %v984_v28 = vpop.f32.mrf.mxu1  ;;  %991 = vmatmul.mubr.msk.bf16.vlgmr.msra.gmra.mxu1 %vm285_vm0, %v683_v27 }
 0x298   :  { %v653_v33 = vadd.f32 %v984_v28, %v571_v30  ;;  %v747_v28 = vsel %vm285_vm0, %v731_v9, %v733_v4 }
 0x299   :  { %v644_v29 = vpop.f32.mrf.mxu1 }
 0x29a   :  { %v645_v31 = vadd.f32 %v644_v29, %v567_v24  ;;  %v672_v40 = vadd.f32 %v918_v12, %v653_v33  ;;  %v749_v24 = vsel %vm285_vm0, %v739_v21, %v741_v17 }
 0x29b   :  { %v985_v34 = vpop.f32.mrf.mxu1 }
 0x29c   :  { %v656_v35 = vadd.f32 %v985_v34, %v573_v32  ;;  %v670_v37 = vadd.f32 %v918_v12, %v645_v31  ;;  %v680_v45 = vmax.f32 %v672_v40, 0.0 }
 0x29d   :  { %v647_v36 = vpop.f32.mrf.mxu1 }
 0x29e   :  { %v673_v38 = vadd.f32 %v918_v12, %v656_v35  ;;  %v648_v39 = vadd.f32 %v647_v36, %v569_v26  ;;  %v678_v43 = vmax.f32 %v670_v37, 0.0 }
 0x2a0   :  { %v671_v41 = vadd.f32 %v918_v12, %v648_v39  ;;  %v681_v42 = vmax.f32 %v673_v38, 0.0 }
 0x2a2   :  { %v679_v44 = vmax.f32 %v671_v41, 0.0  ;;  %v685_v47 = vpack.c.bf16 %v681_v42, %v680_v45 }
 0x2a4   :  { %v684_v46 = vpack.c.bf16 %v679_v44, %v678_v43 }
 0x2a6   :  { %994 = vmatprep.mubr.msk.bf16.mxu1 %vm285_vm0, %v684_v46 }
 0x2a7   :  { %995 = vmatmul.mubr.msk.bf16.gmra.mxu1 %vm285_vm0, %v685_v47 }
 0x357   :  { %v992_v58 = vpop.f32.mrf.mxu1 }
 0x358   :  { %v813_v61 = vadd.f32 %v992_v58, %v744_v57 }
 0x359   :  { %v804_v63 = vpop.f32.mrf.mxu1 }
 0x35a   :  { %v844_v0 = vadd.f32 %v925_v59, %v813_v61  ;;  %v805_v1 = vadd.f32 %v804_v63, %v742_v62 }
 0x35b   :  { %v993_v3 = vpop.f32.mrf.mxu1 }
 0x35c   :  { %852 = vst [vmem:[#allocation2 + $0x10] sm:$0xff] %v844_v0  ;;  %v842_v5 = vadd.f32 %v925_v59, %v805_v1  ;;  %v816_v6 = vadd.f32 %v993_v3, %v745_v2 }
 0x35d   :  { %v807_v8 = vpop.f32.mrf.mxu1 }
 0x35e   :  { %850 = vst [vmem:[#allocation2] sm:$0xff] %v842_v5  ;;  %v845_v10 = vadd.f32 %v925_v59, %v816_v6  ;;  %v808_v11 = vadd.f32 %v807_v8, %v743_v7 }
 0x360   :  { %853 = vst [vmem:[#allocation2 + $0x18] sm:$0xff] %v845_v10  ;;  %v843_v12 = vadd.f32 %v925_v59, %v808_v11 }
 0x362   :  { %851 = vst [vmem:[#allocation2 + $0x8] sm:$0xff] %v843_v12 }
 0x367   :  { %v996_v16 = vpop.f32.mrf.mxu1 }
 0x368   :  { %v829_v18 = vadd.f32 %v996_v16, %v748_v15 }
 0x369   :  { %v820_v20 = vpop.f32.mrf.mxu1 }
 0x36a   :  { %v848_v22 = vadd.f32 %v925_v59, %v829_v18  ;;  %v821_v23 = vadd.f32 %v820_v20, %v746_v19 }
 0x36b   :  { %v997_v25 = vpop.f32.mrf.mxu1 }
 0x36c   :  { %856 = vst [vmem:[#allocation2 + $0x30] sm:$0xff] %v848_v22  ;;  %v846_v26 = vadd.f32 %v925_v59, %v821_v23  ;;  %v832_v27 = vadd.f32 %v997_v25, %v749_v24 }
 0x36d   :  { %v823_v29 = vpop.f32.mrf.mxu1 }
 0x36e   :  { %854 = vst [vmem:[#allocation2 + $0x20] sm:$0xff] %v846_v26  ;;  %v849_v30 = vadd.f32 %v925_v59, %v832_v27  ;;  %v824_v31 = vadd.f32 %v823_v29, %v747_v28 }
 0x370   :  { %857 = vst [vmem:[#allocation2 + $0x38] sm:$0xff] %v849_v30  ;;  %v847_v32 = vadd.f32 %v925_v59, %v824_v31 }
 0x372   :  { %855 = vst [vmem:[#allocation2 + $0x28] sm:$0xff] %v847_v32 }
 0x373   :  { %1056 = shalt.err (!%p1053_p4)
}
 0x374   :  { %s1072_s25 = smov 128   ;;  %s1073_s2 = smov 8  }
 0x375   :  { %869 = dma.vmem_to_hbm [thread:$0]  %s864_s23, 1024, %s1306_s11, [#allocation3], %s1072_s25, %s1072_s25, %s1073_s2  }
 0x376   :  { %1065 = dma.done.wait [#allocation3], 1024  }
 0x377   :  { %1066 = vsyncadd [#allocation3], 4294966272 }
 0x378   :  { %873 = vsyncpa [#allocation3], 1 }

</bundles_post_ra>
